<compile_context>
chip_gen: v5e
topology: v5e:2x2
jax: 0.10.0
libtpu: 0.0.40
codegen_flags: <defaults>
</compile_context>

<pallas_src>
import functools

import jax
import jax.numpy as jnp
from jax import lax
from jax.experimental import pallas as pl
from jax.experimental.pallas import tpu as pltpu


def multihead_mlp_kernel(x_ref, w1_ref, b1_ref, w2_ref, b2_ref,
                         wd_ref, bd_ref, sel_ref, selt_ref, sump_ref,
                         o_ref, *, temperature):
    x = x_ref[...]                                                     # bf16 [TM, IN]

    # All heads' hidden layers in one lane-packed MXU matmul (f32 accumulate).
    h = jnp.dot(x, w1_ref[...], preferred_element_type=jnp.float32) + b1_ref[...]
    h = jnp.maximum(h, 0.0)                                            # f32 [TM, H*HID]

    # All heads' final Linear via block-diagonal packed weights.
    y = jnp.dot(h.astype(jnp.bfloat16), w2_ref[...],
                preferred_element_type=jnp.float32) + b2_ref[...]      # f32 [TM, H*OUT]

    # Per-head L2-normalization scale: 1 / clamp_min(||y_h||_2, 1e-12).
    ss = jnp.dot(y * y, sel_ref[...], preferred_element_type=jnp.float32)  # [TM, H]
    inv = lax.rsqrt(jnp.maximum(ss, 1e-24))                            # [TM, H]

    # Dispatch softmax head weights.
    d = (jnp.dot(x, wd_ref[...], preferred_element_type=jnp.float32)
         + bd_ref[...]) * temperature                                  # [TM, H]
    d = d - jnp.max(d, axis=-1, keepdims=True)
    e = jnp.exp(d)
    w = e * pl.reciprocal(jnp.sum(e, axis=-1, keepdims=True), approx=False)

    # Scale each head block by (head weight / head norm), sum heads, normalize.
    scale = jnp.dot(inv * w, selt_ref[...],
                    preferred_element_type=jnp.float32)                # [TM, H*OUT]
    k = jnp.dot(y * scale, sump_ref[...],
                preferred_element_type=jnp.float32)                    # [TM, OUT]
    kss = jnp.sum(k * k, axis=-1, keepdims=True)
    o_ref[...] = (k * lax.rsqrt(jnp.maximum(kss, 1e-24))).astype(o_ref.dtype)


def multihead_mlp_forward(x, w1p, b1p, w2bd, b2p, wd, bd, sel, selt, sump,
                          *, temperature=1.0, block_rows=512):
    """x: [B, IN] bf16. Packed weights: w1p [IN, H*HID] bf16, w2bd [H*HID, H*OUT]
    bf16 block-diagonal, wd [IN, H] bf16; biases f32; sel/selt/sump f32 selector
    matrices. Returns f32 [B, OUT]."""
    B, in_f = x.shape
    n_heads = wd.shape[1]
    hh = w1p.shape[1]          # H * HID
    ho = w2bd.shape[1]         # H * OUT
    out_f = sump.shape[1]

    tm = min(block_rows, B)
    assert B % tm == 0, "batch must be divisible by the row tile"
    grid = (B // tm,)

    flops = 2 * B * (in_f * hh + hh * ho + in_f * n_heads
                     + 2 * ho * n_heads + ho * out_f)
    transcendentals = B * (2 * n_heads + 1)
    operands = (x, w1p, b1p, w2bd, b2p, wd, bd, sel, selt, sump)
    bytes_accessed = sum(int(a.size) * a.dtype.itemsize for a in operands) + B * out_f * 4

    const = lambda i: (0, 0)
    kernel = functools.partial(multihead_mlp_kernel, temperature=temperature)

    return pl.pallas_call(
        kernel,
        out_shape=jax.ShapeDtypeStruct((B, out_f), jnp.float32),
        grid_spec=pltpu.PrefetchScalarGridSpec(
            num_scalar_prefetch=0,
            grid=grid,
            in_specs=[
                pl.BlockSpec((tm, in_f), lambda i: (i, 0)),   # x: pipelined per tile
                pl.BlockSpec((in_f, hh), const),              # packed W1 (resident)
                pl.BlockSpec((1, hh), const),                 # packed b1
                pl.BlockSpec((hh, ho), const),                # block-diag W2
                pl.BlockSpec((1, ho), const),                 # packed b2
                pl.BlockSpec((in_f, n_heads), const),         # dispatch W
                pl.BlockSpec((1, n_heads), const),            # dispatch b
                pl.BlockSpec((ho, n_heads), const),           # head-sum selector
                pl.BlockSpec((n_heads, ho), const),           # head-broadcast selector
                pl.BlockSpec((ho, out_f), const),             # head-reduce matrix
            ],
            out_specs=pl.BlockSpec((tm, out_f), lambda i: (i, 0)),
        ),
        compiler_params=pltpu.CompilerParams(
            dimension_semantics=("parallel",),
            vmem_limit_bytes=48 * 1024 * 1024,
        ),
        cost_estimate=pl.CostEstimate(
            flops=flops, transcendentals=transcendentals, bytes_accessed=bytes_accessed),
    )(*operands)


def _linear_init(kw, kb, fan_in, fan_out):
    lim = 1.0 / (fan_in ** 0.5)
    w = jax.random.uniform(kw, (fan_in, fan_out), jnp.float32, -lim, lim)
    b = jax.random.uniform(kb, (1, fan_out), jnp.float32, -lim, lim)
    return w, b


if __name__ == "__main__":
    # MultiHeadMlp(in_features=32, out_features=16, n_heads=8,
    #              temperature=0.5, hidden_layers=[64])
    B, IN_F, HID, OUT_F, H = 64, 32, 64, 16, 8
    TEMP = 0.5

    key = jax.random.PRNGKey(0)
    keys = jax.random.split(key, 3 + 4 * H)

    x = jax.random.normal(keys[0], (B, IN_F), jnp.float32)
    xb = x.astype(jnp.bfloat16)

    w1s, b1s, w2s, b2s = [], [], [], []
    idx = 1
    for _ in range(H):
        w1, b1 = _linear_init(keys[idx], keys[idx + 1], IN_F, HID); idx += 2
        w2, b2 = _linear_init(keys[idx], keys[idx + 1], HID, OUT_F); idx += 2
        w1s.append(w1); b1s.append(b1); w2s.append(w2); b2s.append(b2)
    wd, bd = _linear_init(keys[idx], keys[idx + 1], IN_F, H)

    # Pack heads for lane-dense MXU work.
    w1p = jnp.concatenate(w1s, axis=1).astype(jnp.bfloat16)           # [IN, H*HID]
    b1p = jnp.concatenate(b1s, axis=1)                                # [1, H*HID]
    w2bd = jax.scipy.linalg.block_diag(*w2s).astype(jnp.bfloat16)     # [H*HID, H*OUT]
    b2p = jnp.concatenate(b2s, axis=1)                                # [1, H*OUT]
    wdb = wd.astype(jnp.bfloat16)                                     # [IN, H]

    # Selector matrices (0/1, exact in f32): per-head reduce / broadcast / head-sum.
    sel = jnp.kron(jnp.eye(H, dtype=jnp.float32), jnp.ones((OUT_F, 1), jnp.float32))
    selt = sel.T
    sump = jnp.kron(jnp.ones((H, 1), jnp.float32), jnp.eye(OUT_F, dtype=jnp.float32))

    out = multihead_mlp_forward(xb, w1p, b1p, w2bd, b2p, wdb, bd, sel, selt, sump,
                                temperature=TEMP, block_rows=32)
    out = jax.block_until_ready(out)

    # Pure-JAX reference mirroring the PyTorch MultiHeadMlp structure
    # (same bf16 MXU inputs / f32 accumulation as the kernel).
    head_outs = []
    for h in range(H):
        hid = jnp.maximum(
            jnp.dot(xb, w1s[h].astype(jnp.bfloat16),
                    preferred_element_type=jnp.float32) + b1s[h], 0.0)
        yy = jnp.dot(hid.astype(jnp.bfloat16), w2s[h].astype(jnp.bfloat16),
                     preferred_element_type=jnp.float32) + b2s[h]
        nrm = jnp.maximum(jnp.sqrt(jnp.sum(yy * yy, axis=-1, keepdims=True)), 1e-12)
        head_outs.append(yy / nrm)
    disp = (jnp.dot(xb, wdb, preferred_element_type=jnp.float32) + bd) * TEMP
    hw = jax.nn.softmax(disp, axis=-1)
    kk = jnp.sum(hw[:, :, None] * jnp.stack(head_outs, axis=1), axis=1)
    ref = kk / jnp.maximum(jnp.sqrt(jnp.sum(kk * kk, axis=-1, keepdims=True)), 1e-12)

    assert out.shape == (B, OUT_F)
    max_err = float(jnp.max(jnp.abs(out - ref)))
    assert jnp.allclose(out, ref, atol=2e-3, rtol=2e-3), max_err

    print("KERNEL_OK")
</pallas_src>

<mosaic_0001>
module attributes {stable_mosaic.version = 11 : i64} {
  func.func @multihead_mlp_kernel(%arg0: i32, %arg1: memref<32x32xbf16, #tpu.memory_space<vmem>>, %arg2: memref<32x512xbf16, #tpu.memory_space<vmem>>, %arg3: memref<1x512xf32, #tpu.memory_space<vmem>>, %arg4: memref<512x128xbf16, #tpu.memory_space<vmem>>, %arg5: memref<1x128xf32, #tpu.memory_space<vmem>>, %arg6: memref<32x8xbf16, #tpu.memory_space<vmem>>, %arg7: memref<1x8xf32, #tpu.memory_space<vmem>>, %arg8: memref<128x8xf32, #tpu.memory_space<vmem>>, %arg9: memref<8x128xf32, #tpu.memory_space<vmem>>, %arg10: memref<128x16xf32, #tpu.memory_space<vmem>>, %arg11: memref<32x16xf32, #tpu.memory_space<vmem>>) attributes {dimension_semantics = [#tpu.dimension_semantics<parallel>], iteration_bounds = array<i64: 2>, scalar_prefetch = 0 : i64, scratch_operands = 0 : i64, tpu.core_type = #tpu.core_type<tc>, window_params = [{transform_indices = @transform_0, window_bounds = array<i64: 32, 32>}, {pipeline_mode = #tpu.pipeline_mode<synchronous>, transform_indices = @transform_1, window_bounds = array<i64: 32, 512>}, {pipeline_mode = #tpu.pipeline_mode<synchronous>, transform_indices = @transform_2, window_bounds = array<i64: 1, 512>}, {pipeline_mode = #tpu.pipeline_mode<synchronous>, transform_indices = @transform_3, window_bounds = array<i64: 512, 128>}, {pipeline_mode = #tpu.pipeline_mode<synchronous>, transform_indices = @transform_4, window_bounds = array<i64: 1, 128>}, {pipeline_mode = #tpu.pipeline_mode<synchronous>, transform_indices = @transform_5, window_bounds = array<i64: 32, 8>}, {pipeline_mode = #tpu.pipeline_mode<synchronous>, transform_indices = @transform_6, window_bounds = array<i64: 1, 8>}, {pipeline_mode = #tpu.pipeline_mode<synchronous>, transform_indices = @transform_7, window_bounds = array<i64: 128, 8>}, {pipeline_mode = #tpu.pipeline_mode<synchronous>, transform_indices = @transform_8, window_bounds = array<i64: 8, 128>}, {pipeline_mode = #tpu.pipeline_mode<synchronous>, transform_indices = @transform_9, window_bounds = array<i64: 128, 16>}, {transform_indices = @transform_10, window_bounds = array<i64: 32, 16>}]} {
    %c0 = arith.constant 0 : index
    %c0_0 = arith.constant 0 : index
    %0 = vector.load %arg1[%c0, %c0_0] : memref<32x32xbf16, #tpu.memory_space<vmem>>, vector<32x32xbf16>
    %c0_1 = arith.constant 0 : index
    %c0_2 = arith.constant 0 : index
    %1 = vector.load %arg2[%c0_1, %c0_2] : memref<32x512xbf16, #tpu.memory_space<vmem>>, vector<32x512xbf16>
    %cst = arith.constant dense<0.000000e+00> : vector<32x512xf32>
    %2 = tpu.matmul %0, %1, %cst {dimension_numbers = #tpu.dot_dimension_numbers<[1], [0], [0], [1], [0, 0, 1, 1], [], []>} : vector<32x32xbf16>, vector<32x512xbf16>, vector<32x512xf32> -> vector<32x512xf32>
    %c0_3 = arith.constant 0 : index
    %c0_4 = arith.constant 0 : index
    %3 = vector.load %arg3[%c0_3, %c0_4] : memref<1x512xf32, #tpu.memory_space<vmem>>, vector<1x512xf32>
    %4 = vector.broadcast %3 : vector<1x512xf32> to vector<32x512xf32>
    %5 = arith.addf %2, %4 : vector<32x512xf32>
    %cst_5 = arith.constant 0.000000e+00 : f32
    %6 = vector.broadcast %cst_5 : f32 to vector<32x512xf32>
    %7 = arith.maximumf %5, %6 : vector<32x512xf32>
    %8 = arith.truncf %7 : vector<32x512xf32> to vector<32x512xbf16>
    %c0_6 = arith.constant 0 : index
    %c0_7 = arith.constant 0 : index
    %9 = vector.load %arg4[%c0_6, %c0_7] : memref<512x128xbf16, #tpu.memory_space<vmem>>, vector<512x128xbf16>
    %cst_8 = arith.constant dense<0.000000e+00> : vector<32x128xf32>
    %10 = tpu.matmul %8, %9, %cst_8 {dimension_numbers = #tpu.dot_dimension_numbers<[1], [0], [0], [1], [0, 0, 1, 1], [], []>} : vector<32x512xbf16>, vector<512x128xbf16>, vector<32x128xf32> -> vector<32x128xf32>
    %c0_9 = arith.constant 0 : index
    %c0_10 = arith.constant 0 : index
    %11 = vector.load %arg5[%c0_9, %c0_10] : memref<1x128xf32, #tpu.memory_space<vmem>>, vector<1x128xf32>
    %12 = vector.broadcast %11 : vector<1x128xf32> to vector<32x128xf32>
    %13 = arith.addf %10, %12 : vector<32x128xf32>
    %14 = arith.mulf %13, %13 : vector<32x128xf32>
    %c0_11 = arith.constant 0 : index
    %c0_12 = arith.constant 0 : index
    %15 = vector.load %arg8[%c0_11, %c0_12] : memref<128x8xf32, #tpu.memory_space<vmem>>, vector<128x8xf32>
    %cst_13 = arith.constant dense<0.000000e+00> : vector<32x8xf32>
    %16 = tpu.matmul %14, %15, %cst_13 {dimension_numbers = #tpu.dot_dimension_numbers<[1], [0], [0], [1], [0, 0, 1, 1], [], []>} : vector<32x128xf32>, vector<128x8xf32>, vector<32x8xf32> -> vector<32x8xf32>
    %cst_14 = arith.constant 1.000000e-24 : f32
    %17 = vector.broadcast %cst_14 : f32 to vector<32x8xf32>
    %18 = arith.maximumf %16, %17 : vector<32x8xf32>
    %19 = math.rsqrt %18 : vector<32x8xf32>
    %c0_15 = arith.constant 0 : index
    %c0_16 = arith.constant 0 : index
    %20 = vector.load %arg6[%c0_15, %c0_16] : memref<32x8xbf16, #tpu.memory_space<vmem>>, vector<32x8xbf16>
    %cst_17 = arith.constant dense<0.000000e+00> : vector<32x8xf32>
    %21 = tpu.matmul %0, %20, %cst_17 {dimension_numbers = #tpu.dot_dimension_numbers<[1], [0], [0], [1], [0, 0, 1, 1], [], []>} : vector<32x32xbf16>, vector<32x8xbf16>, vector<32x8xf32> -> vector<32x8xf32>
    %c0_18 = arith.constant 0 : index
    %c0_19 = arith.constant 0 : index
    %22 = vector.load %arg7[%c0_18, %c0_19] : memref<1x8xf32, #tpu.memory_space<vmem>>, vector<1x8xf32>
    %23 = vector.broadcast %22 : vector<1x8xf32> to vector<32x8xf32>
    %24 = arith.addf %21, %23 : vector<32x8xf32>
    %cst_20 = arith.constant 5.000000e-01 : f32
    %25 = vector.broadcast %cst_20 : f32 to vector<32x8xf32>
    %26 = arith.mulf %24, %25 : vector<32x8xf32>
    %cst_21 = arith.constant dense<0xFF800000> : vector<32xf32>
    %27 = vector.multi_reduction <maximumf>, %26, %cst_21 [1] : vector<32x8xf32> to vector<32xf32>
    %28 = vector.shape_cast %27 : vector<32xf32> to vector<32x1xf32>
    %29 = vector.broadcast %28 : vector<32x1xf32> to vector<32x8xf32>
    %30 = arith.subf %26, %29 : vector<32x8xf32>
    %31 = math.exp %30 : vector<32x8xf32>
    %cst_22 = arith.constant dense<0.000000e+00> : vector<32xf32>
    %32 = vector.multi_reduction <add>, %31, %cst_22 [1] : vector<32x8xf32> to vector<32xf32>
    %33 = vector.shape_cast %32 : vector<32xf32> to vector<32x1xf32>
    %34 = tpu.reciprocal %33 : vector<32x1xf32> -> vector<32x1xf32>
    %35 = vector.broadcast %34 : vector<32x1xf32> to vector<32x8xf32>
    %36 = arith.mulf %31, %35 : vector<32x8xf32>
    %37 = arith.mulf %19, %36 : vector<32x8xf32>
    %c0_23 = arith.constant 0 : index
    %c0_24 = arith.constant 0 : index
    %38 = vector.load %arg9[%c0_23, %c0_24] : memref<8x128xf32, #tpu.memory_space<vmem>>, vector<8x128xf32>
    %cst_25 = arith.constant dense<0.000000e+00> : vector<32x128xf32>
    %39 = tpu.matmul %37, %38, %cst_25 {dimension_numbers = #tpu.dot_dimension_numbers<[1], [0], [0], [1], [0, 0, 1, 1], [], []>} : vector<32x8xf32>, vector<8x128xf32>, vector<32x128xf32> -> vector<32x128xf32>
    %40 = arith.mulf %13, %39 : vector<32x128xf32>
    %c0_26 = arith.constant 0 : index
    %c0_27 = arith.constant 0 : index
    %41 = vector.load %arg10[%c0_26, %c0_27] : memref<128x16xf32, #tpu.memory_space<vmem>>, vector<128x16xf32>
    %cst_28 = arith.constant dense<0.000000e+00> : vector<32x16xf32>
    %42 = tpu.matmul %40, %41, %cst_28 {dimension_numbers = #tpu.dot_dimension_numbers<[1], [0], [0], [1], [0, 0, 1, 1], [], []>} : vector<32x128xf32>, vector<128x16xf32>, vector<32x16xf32> -> vector<32x16xf32>
    %43 = arith.mulf %42, %42 : vector<32x16xf32>
    %cst_29 = arith.constant dense<0.000000e+00> : vector<32xf32>
    %44 = vector.multi_reduction <add>, %43, %cst_29 [1] : vector<32x16xf32> to vector<32xf32>
    %45 = vector.shape_cast %44 : vector<32xf32> to vector<32x1xf32>
    %cst_30 = arith.constant 1.000000e-24 : f32
    %46 = vector.broadcast %cst_30 : f32 to vector<32x1xf32>
    %47 = arith.maximumf %45, %46 : vector<32x1xf32>
    %48 = math.rsqrt %47 : vector<32x1xf32>
    %49 = vector.broadcast %48 : vector<32x1xf32> to vector<32x16xf32>
    %50 = arith.mulf %42, %49 : vector<32x16xf32>
    %c0_31 = arith.constant 0 : index
    %c0_32 = arith.constant 0 : index
    %51 = vector.load %arg11[%c0_31, %c0_32] : memref<32x16xf32, #tpu.memory_space<vmem>>, vector<32x16xf32>
    tpu.vector_store %arg11[%c0_31, %c0_32], %50 {strides = array<i32>} : memref<32x16xf32, #tpu.memory_space<vmem>>, vector<32x16xf32>,
    return
  }
  func.func @transform_0(%arg0: i32) -> (i32, i32) {
    %c0_i32 = arith.constant 0 : i32
    %c0_i32_0 = arith.constant 0 : i32
    return %arg0, %c0_i32 : i32, i32
  }
  func.func @transform_1(%arg0: i32) -> (i32, i32) {
    %c0_i32 = arith.constant 0 : i32
    %c0_i32_0 = arith.constant 0 : i32
    %c0_i32_1 = arith.constant 0 : i32
    return %c0_i32, %c0_i32_0 : i32, i32
  }
  func.func @transform_2(%arg0: i32) -> (i32, i32) {
    %c0_i32 = arith.constant 0 : i32
    %c0_i32_0 = arith.constant 0 : i32
    %c0_i32_1 = arith.constant 0 : i32
    return %c0_i32, %c0_i32_0 : i32, i32
  }
  func.func @transform_3(%arg0: i32) -> (i32, i32) {
    %c0_i32 = arith.constant 0 : i32
    %c0_i32_0 = arith.constant 0 : i32
    %c0_i32_1 = arith.constant 0 : i32
    return %c0_i32, %c0_i32_0 : i32, i32
  }
  func.func @transform_4(%arg0: i32) -> (i32, i32) {
    %c0_i32 = arith.constant 0 : i32
    %c0_i32_0 = arith.constant 0 : i32
    %c0_i32_1 = arith.constant 0 : i32
    return %c0_i32, %c0_i32_0 : i32, i32
  }
  func.func @transform_5(%arg0: i32) -> (i32, i32) {
    %c0_i32 = arith.constant 0 : i32
    %c0_i32_0 = arith.constant 0 : i32
    %c0_i32_1 = arith.constant 0 : i32
    return %c0_i32, %c0_i32_0 : i32, i32
  }
  func.func @transform_6(%arg0: i32) -> (i32, i32) {
    %c0_i32 = arith.constant 0 : i32
    %c0_i32_0 = arith.constant 0 : i32
    %c0_i32_1 = arith.constant 0 : i32
    return %c0_i32, %c0_i32_0 : i32, i32
  }
  func.func @transform_7(%arg0: i32) -> (i32, i32) {
    %c0_i32 = arith.constant 0 : i32
    %c0_i32_0 = arith.constant 0 : i32
    %c0_i32_1 = arith.constant 0 : i32
    return %c0_i32, %c0_i32_0 : i32, i32
  }
  func.func @transform_8(%arg0: i32) -> (i32, i32) {
    %c0_i32 = arith.constant 0 : i32
    %c0_i32_0 = arith.constant 0 : i32
    %c0_i32_1 = arith.constant 0 : i32
    return %c0_i32, %c0_i32_0 : i32, i32
  }
  func.func @transform_9(%arg0: i32) -> (i32, i32) {
    %c0_i32 = arith.constant 0 : i32
    %c0_i32_0 = arith.constant 0 : i32
    %c0_i32_1 = arith.constant 0 : i32
    return %c0_i32, %c0_i32_0 : i32, i32
  }
  func.func @transform_10(%arg0: i32) -> (i32, i32) {
    %c0_i32 = arith.constant 0 : i32
    %c0_i32_0 = arith.constant 0 : i32
    return %arg0, %c0_i32 : i32, i32
  }
}

</mosaic_0001>

<bundles_post_ra>
// kernel: tpu_custom_call.1
= control target key start
LH: loop header
LB: loop body
LE: loop exit
PB: predicated region body
PF: predicated region fallthrough
CT: control target
= control target key end

     0   :  { %15 = vsyncpa [#allocation3], 0  ;;  %s2285_s0 = inlined_call_operand.vmem [shape: bf16[64,32], index: 0, kind: input, shape index: {}]   ;;  %s2286_s1 = inlined_call_operand.vmem [shape: bf16[32,512], index: 1, kind: input, shape index: {}]   ;;  %s2287_s2 = inlined_call_operand.hbm [shape: f32[1,512], index: 2, kind: input, shape index: {}]   ;;  %s2288_s3 = inlined_call_operand.vmem [shape: bf16[512,128], index: 3, kind: input, shape index: {}]   ;;  %s2289_s4 = inlined_call_operand.vmem [shape: f32[1,128], index: 4, kind: input, shape index: {}]   ;;  %s2290_s5 = inlined_call_operand.vmem [shape: bf16[32,8], index: 5, kind: input, shape index: {}]   ;;  %s2291_s6 = inlined_call_operand.hbm [shape: f32[1,8], index: 6, kind: input, shape index: {}]   ;;  %s2292_s7 = inlined_call_operand.vmem [shape: f32[128,8], index: 7, kind: input, shape index: {}]   ;;  %s2293_s8 = inlined_call_operand.vmem [shape: f32[8,128], index: 8, kind: input, shape index: {}]   ;;  %s2294_s9 = inlined_call_operand.vmem [shape: f32[128,16], index: 9, kind: input, shape index: {}]   ;;  %s2295_s10 = inlined_call_operand.vmem [shape: f32[64,16], index: 10, kind: output, shape index: {}]  }
   0x1   :  { %16 = vsyncpa [#allocation5], 0  ;;  %s1829_s13 = smov 0  }
   0x2 LB: > { %s283_s16 = sshll.u32 %s2287_s2, 4  ;;  %s1384_s17 = sadd.s32 4294967295, %s1770_s13   ;;  %s1770_s13 = sphi %s1829_s13, %s22_s13   ;;  %s284_s16 = int_to_ptr.hbm [resolvable:$true] %s283_s16 }
   0x3   : > { %p1386_p0 = scmp.ge.s32.totalorder %s1770_s13, 1  ;;  %p268_p1 = scmp.lt.s32.totalorder %s1770_s13, 3 }
   0x4   : > { %p1840_p2 = scmp.eq.s32.totalorder %s1384_s17, 0  ;;  %s1772_s20 = smov [#allocation2]  }
   0x5   : > { %p1844_p3 = pnand %p1386_p0, %p268_p1  ;;  %s285_s21 = sshll.u32 %s1772_s20, 4  ;;  %s286_s21 = int_to_ptr.vmem [resolvable:$true] %s285_s21 }
   0x6   : > { %s304_s24 = sshll.u32 %s2291_s6, 4  ;;  %s1773_s25 = smov [#allocation4]   ;;  %s305_s24 = int_to_ptr.hbm [resolvable:$true] %s304_s24 }
   0x7   : > { %p1641_p4 = pneg %p1844_p3  ;;  %s306_s26 = sshll.u32 %s1773_s25, 4  ;;  %s307_s26 = int_to_ptr.vmem [resolvable:$true] %s306_s26 }
   0x8   : > { %337 = sbr.rel (%p1844_p3) target bundleno = 1028 (0x404), region = 60 }
   0x9   : > { %p1642_p5 = pnand %p1840_p2, %p1641_p4 }
   0xb   : > { %1644 = dma.hbm_to_vmem [thread:$0]  (!%p1642_p5), %s284_s16, 64, %s286_s21, [#allocation3]  }
   0xc   : > { %1647 = dma.hbm_to_vmem [thread:$0]  (!%p1642_p5), %s305_s24, 16, %s307_s26, [#allocation5]  }
   0xd   : > { %1761 = dma.done.wait (%p1840_p2), [#allocation3], 64  }
   0xe   : > { %1763 = vsyncadd (%p1840_p2), [#allocation3], 4294967232 }
   0xf   : > { %1765 = dma.done.wait (%p1840_p2), [#allocation5], 16  }
  0x10   : > { %1767 = vsyncadd (%p1840_p2), [#allocation5], 4294967280  ;;  %s1393_s27 = sshll.u32 %s1384_s17, 2  ;;  %v1423_v0 = vld [vmem:[%s2286_s1 + $0x20] sm:$0xf]  ;;  %v1614_v25 = vld [vmem:[%s2288_s3 + $0x78] sm:$0xff] }
  0x11   : > { %p382_p6 = scmp.lt.s32.totalorder %s1393_s27, 7  ;;  %v1597_v1 = vld [vmem:[%s2286_s1 + $0x2c] sm:$0xf0]  ;;  %v1595_v2 = vld [vmem:[%s2286_s1 + $0x24] sm:$0xf]  ;;  %vm466_vm0 = vcmask 261120  }
  0x12   : > { %v1424_v3 = vor.u32 %v1597_v1, %v1423_v0  ;;  %v1425_v4 = vld [vmem:[%s2286_s1 + $0x30] sm:$0xf0]  ;;  %v1431_v5 = vld [vmem:[%s2286_s1 + $0x28] sm:$0xf]  ;;  %v1598_v6 = vld [vmem:[%s2286_s1 + $0x34] sm:$0xf0] }
  0x13   : > { %s2299_s27 = smov (!%p382_p6, %s1393_s27), 7  ;;  %v1428_v7 = vor.u32 %v1595_v2, %v1425_v4  ;;  %v1432_v8 = vor.u32 %v1598_v6, %v1431_v5  ;;  %v1596_v9 = vld [vmem:[%s2286_s1 + $0x2c] sm:$0xf]  ;;  %v1433_v10 = vld [vmem:[%s2286_s1 + $0x38] sm:$0xf0]  ;;  %v1613_v28 = vld [vmem:[%s2288_s3 + $0x70] sm:$0xff] }
  0x14   : > { %s1394_s28 = sshll.u32 %s2299_s27, 2  ;;  %v1407_v11 = vld [vmem:[%s2286_s1] sm:$0xf]  ;;  %479 = vmatpush.bf16.msra.mxu0 %v1424_v3  ;;  %v1436_v12 = vor.u32 %v1596_v9, %v1433_v10  ;;  %v1593_v13 = vld [vmem:[%s2286_s1 + $0xc] sm:$0xf0]  ;;  %v1622_v26 = vld [vmem:[%s2288_s3 + $0xb8] sm:$0xff] }
  0x15   : > { %v1591_v14 = vld [vmem:[%s2286_s1 + $0x4] sm:$0xf]  ;;  %v1409_v15 = vld [vmem:[%s2286_s1 + $0x10] sm:$0xf0]  ;;  %s1907_s19 = scalar_lea.vmem %s2285_s0, %s1394_s28  ;;  %498 = vmatpush.bf16.msra.mxu1 %v1428_v7  ;;  %517 = vmatpush.bf16.msra.mxu2 %v1432_v8  ;;  %v1408_v16 = vor.u32 %v1593_v13, %v1407_v11  ;;  %v1415_v18 = vld [vmem:[%s2286_s1 + $0x8] sm:$0xf] }
  0x16   : > { %v1412_v17 = vor.u32 %v1591_v14, %v1409_v15  ;;  %v1594_v19 = vld [vmem:[%s2286_s1 + $0x14] sm:$0xf0]  ;;  %v1592_v20 = vld [vmem:[%s2286_s1 + $0xc] sm:$0xf]  ;;  %536 = vmatpush.bf16.msra.mxu3 %v1436_v12  ;;  %v1417_v22 = vld [vmem:[%s2286_s1 + $0x18] sm:$0xf0] }
  0x17   : > { %v1416_v21 = vor.u32 %v1594_v19, %v1415_v18  ;;  %v1420_v23 = vor.u32 %v1592_v20, %v1417_v22  ;;  %v1922_v24 = vld [vmem:[%s1907_s19] sm:$0xff]  ;;  %v1606_v27 = vld [vmem:[%s2288_s3 + $0x38] sm:$0xff]  ;;  %v1621_v30 = vld [vmem:[%s2288_s3 + $0xb0] sm:$0xff]  ;;  %vm1045_vm1 = vcmask 64512   ;;  %s1396_s22 = sshll.u32 %s2299_s27, 3 }
  0x18   : > { %480 = vmatpush.bf16.msra.mxu0 %v1408_v16  ;;  %v1630_v29 = vld [vmem:[%s2288_s3 + $0xf8] sm:$0xff]  ;;  %v1605_v31 = vld [vmem:[%s2288_s3 + $0x30] sm:$0xff]  ;;  %v1612_v32 = vld [vmem:[%s2288_s3 + $0x68] sm:$0xff]  ;;  %s2271_s24 = scalar_lea.vmem %s2295_s10, %s1396_s22 }
  0x19   : > { %499 = vmatpush.bf16.msra.mxu1 %v1412_v17  ;;  %518 = vmatpush.bf16.msra.mxu2 %v1416_v21  ;;  %v1629_v33 = vld [vmem:[%s2288_s3 + $0xf0] sm:$0xff]  ;;  %v1620_v34 = vld [vmem:[%s2288_s3 + $0xa8] sm:$0xff]  ;;  %v1611_v36 = vld [vmem:[%s2288_s3 + $0x60] sm:$0xff] }
  0x1a   : > { %537 = vmatpush.bf16.msra.mxu3 %v1420_v23  ;;  %v1604_v35 = vld [vmem:[%s2288_s3 + $0x28] sm:$0xff]  ;;  %v1603_v37 = vld [vmem:[%s2288_s3 + $0x20] sm:$0xff]  ;;  %v1610_v38 = vld [vmem:[%s2288_s3 + $0x58] sm:$0xff] }
  0x1b   : > { %1437 = vmatmul.msk.bf16.vlgmr.msra.gmra.mxu0 %vm466_vm0, %v1922_v24  ;;  %v1975_v39 = vld [vmem:[%s1907_s19 + $0x8] sm:$0xff]  ;;  %v1602_v40 = vld [vmem:[%s2288_s3 + $0x18] sm:$0xff]  ;;  %v1619_v42 = vld [vmem:[%s2288_s3 + $0xa0] sm:$0xff] }
  0x1c   : > { %1439 = vmatmul.msk.bf16.vlgmr.msra.gmra.mxu1 %vm466_vm0, %v1922_v24  ;;  %1441 = vmatmul.msk.bf16.vlgmr.msra.gmra.mxu2 %vm466_vm0, %v1922_v24  ;;  %v1628_v41 = vld [vmem:[%s2288_s3 + $0xe8] sm:$0xff]  ;;  %v1609_v43 = vld [vmem:[%s2288_s3 + $0x50] sm:$0xff]  ;;  %v1627_v45 = vld [vmem:[%s2288_s3 + $0xe0] sm:$0xff] }
  0x1d   : > { %852 = vmatpush.bf16.msrb.mxu1 %v1614_v25  ;;  %871 = vmatpush.bf16.msrb.mxu2 %v1622_v26  ;;  %v1601_v44 = vld [vmem:[%s2288_s3 + $0x10] sm:$0xff]  ;;  %v1618_v46 = vld [vmem:[%s2288_s3 + $0x98] sm:$0xff]  ;;  %v1608_v47 = vld [vmem:[%s2288_s3 + $0x48] sm:$0xff] }
  0x1e   : > { %1443 = vmatmul.msk.bf16.vlgmr.msra.gmra.mxu3 %vm466_vm0, %v1922_v24  ;;  %833 = vmatpush.bf16.msrb.mxu0 %v1606_v27  ;;  %v1600_v48 = vld [vmem:[%s2288_s3 + $0x8] sm:$0xff]  ;;  %v1626_v49 = vld [vmem:[%s2288_s3 + $0xd8] sm:$0xff]  ;;  %v1617_v50 = vld [vmem:[%s2288_s3 + $0x90] sm:$0xff] }
  0x1f   : > { %890 = vmatpush.bf16.msrb.mxu3 %v1630_v29  ;;  %v1607_v51 = vld [vmem:[%s2288_s3 + $0x40] sm:$0xff]  ;;  %v1625_v53 = vld [vmem:[%s2288_s3 + $0xd0] sm:$0xff]  ;;  %v1616_v54 = vld [vmem:[%s2288_s3 + $0x88] sm:$0xff] }
  0x20   : > { %v1599_v52 = vld [vmem:[%s2288_s3] sm:$0xff]  ;;  %v1624_v55 = vld [vmem:[%s2288_s3 + $0xc8] sm:$0xff] }
  0x21   : > { %853 = vmatpush.bf16.msrb.mxu1 %v1613_v28  ;;  %872 = vmatpush.bf16.msrb.mxu2 %v1621_v30  ;;  %v1615_v56 = vld [vmem:[%s2288_s3 + $0x80] sm:$0xff]  ;;  %v1632_v58 = vld [vmem:[%s2290_s5 + $0x8] sm:$0xff] }
  0x22   : > { %834 = vmatpush.bf16.msrb.mxu0 %v1605_v31  ;;  %v1623_v57 = vld [vmem:[%s2288_s3 + $0xc0] sm:$0xff] }
  0x23   : > { %891 = vmatpush.bf16.msrb.mxu3 %v1629_v33  ;;  %v406_v59 = vld [vmem:[#allocation2] sm:$0xf] }
  0x24   : > { %v408_v61 = vperm.slane %v406_v59, 0  ;;  %v1631_v63 = vld [vmem:[%s2290_s5] sm:$0xff]  ;;  %v409_v0 = vperm.slane %v406_v59, 1  ;;  %v410_v4 = vperm.slane %v406_v59, 2  ;;  %v411_v10 = vperm.slane %v406_v59, 3 }
  0x25   : > { %854 = vmatpush.bf16.msrb.mxu1 %v1612_v32  ;;  %873 = vmatpush.bf16.msrb.mxu2 %v1620_v34 }
  0x26   : > { %835 = vmatpush.bf16.msrb.mxu0 %v1604_v35 }
  0x27   : > { %892 = vmatpush.bf16.msrb.mxu3 %v1628_v41 }
  0x29   : > { %855 = vmatpush.bf16.msrb.mxu1 %v1611_v36  ;;  %874 = vmatpush.bf16.msrb.mxu2 %v1619_v42 }
  0x2a   : > { %836 = vmatpush.bf16.msrb.mxu0 %v1603_v37 }
  0x2b   : > { %1438 = vmatmul.msk.bf16.gmra.mxu0 %vm466_vm0, %v1975_v39  ;;  %893 = vmatpush.bf16.msrb.mxu3 %v1627_v45 }
  0x2c   : > { %1440 = vmatmul.msk.bf16.gmra.mxu1 %vm466_vm0, %v1975_v39  ;;  %1442 = vmatmul.msk.bf16.gmra.mxu2 %vm466_vm0, %v1975_v39 }
  0x2d   : > { %856 = vmatpush.bf16.msrb.mxu1 %v1610_v38  ;;  %875 = vmatpush.bf16.msrb.mxu2 %v1618_v46 }
  0x2e   : > { %1444 = vmatmul.msk.bf16.gmra.mxu3 %vm466_vm0, %v1975_v39  ;;  %837 = vmatpush.bf16.msrb.mxu0 %v1602_v40 }
  0x2f   : > { %894 = vmatpush.bf16.msrb.mxu3 %v1626_v49 }
  0x31   : > { %857 = vmatpush.bf16.msrb.mxu1 %v1609_v43  ;;  %876 = vmatpush.bf16.msrb.mxu2 %v1617_v50 }
  0x32   : > { %838 = vmatpush.bf16.msrb.mxu0 %v1601_v44 }
  0x33   : > { %895 = vmatpush.bf16.msrb.mxu3 %v1625_v53  ;;  %v928_v53 = vld [vmem:[%s2292_s7 + $0x78] sm:$0xff] }
  0x35   : > { %858 = vmatpush.bf16.msrb.mxu1 %v1608_v47  ;;  %877 = vmatpush.bf16.msrb.mxu2 %v1616_v54  ;;  %v927_v54 = vld [vmem:[%s2292_s7 + $0x70] sm:$0xff] }
  0x36   : > { %839 = vmatpush.bf16.msrb.mxu0 %v1600_v48 }
  0x37   : > { %896 = vmatpush.bf16.msrb.mxu3 %v1624_v55 }
  0x39   : > { %859 = vmatpush.bf16.msrb.mxu1 %v1607_v51  ;;  %878 = vmatpush.bf16.msrb.mxu2 %v1615_v56 }
  0x3a   : > { %840 = vmatpush.bf16.msrb.mxu0 %v1599_v52 }
  0x3b   : > { %897 = vmatpush.bf16.msrb.mxu3 %v1623_v57 }
  0x3d   : > { %1028 = vmatpush.bf16.msra.mxu1 %v1632_v58  ;;  %v926_v58 = vld [vmem:[%s2292_s7 + $0x68] sm:$0xff] }
  0x3e   : > { %929 = vmatpush.msra.mxu0 %v928_v53 }
  0x40   : > { %930 = vmatpush.msra.mxu0 %v927_v54 }
  0x41   : > { %1029 = vmatpush.bf16.msra.mxu1 %v1631_v63  ;;  %v924_v63 = vld [vmem:[%s2292_s7 + $0x58] sm:$0xff] }
  0x42   : > { %931 = vmatpush.msra.mxu0 %v926_v58 }
  0x98   : > { %v482_v60 = vpop.f32.mrf.mxu0 }
  0x99   : > { %v501_v62 = vpop.f32.mrf.mxu1  ;;  %v483_v1 = vadd.f32 %v482_v60, %v408_v61 }
  0x9a   : > { %v502_v3 = vadd.f32 %v501_v62, %v409_v0 }
  0x9b   : > { %v549_v7 = vmax.f32 %v483_v1, 0.0  ;;  %v922_v1 = vld [vmem:[%s2292_s7 + $0x48] sm:$0xff] }
  0x9c   : > { %v550_v13 = vmax.f32 %v502_v3, 0.0  ;;  %v920_v3 = vld [vmem:[%s2292_s7 + $0x38] sm:$0xff] }
  0x9f   : > { %v520_v2 = vpop.f32.mrf.mxu2 }
  0xa0   : > { %v484_v5 = vpop.f32.mrf.mxu0  ;;  %v521_v14 = vadd.f32 %v520_v2, %v410_v4  ;;  %v921_v2 = vld [vmem:[%s2292_s7 + $0x40] sm:$0xff] }
  0xa1   : > { %v539_v6 = vpop.f32.mrf.mxu3  ;;  %v485_v8 = vadd.f32 %v484_v5, %v408_v61  ;;  %v503_v9 = vpop.f32.mrf.mxu1  ;;  %v916_v5 = vld [vmem:[%s2292_s7 + $0x18] sm:$0xff] }
  0xa2   : > { %v504_v11 = vadd.f32 %v503_v9, %v409_v0  ;;  %v540_v17 = vadd.f32 %v539_v6, %v411_v10  ;;  %v551_v20 = vmax.f32 %v521_v14, 0.0  ;;  %v915_v6 = vld [vmem:[%s2292_s7 + $0x10] sm:$0xff] }
  0xa3   : > { %v553_v12 = vmax.f32 %v485_v8, 0.0  ;;  %v913_v8 = vld [vmem:[%s2292_s7] sm:$0xff] }
  0xa4   : > { %v554_v15 = vmax.f32 %v504_v11, 0.0  ;;  %v552_v25 = vmax.f32 %v540_v17, 0.0  ;;  %v1662_v11 = vld [vmem:[%s2289_s4] ss:$0 sm:$0xff] }
  0xa5   : > { %v565_v16 = vpack.c.bf16 %v553_v12, %v549_v7  ;;  %v914_v7 = vld [vmem:[%s2292_s7 + $0x8] sm:$0xff] }
  0xa6   : > { %v566_v18 = vpack.c.bf16 %v554_v15, %v550_v13 }
  0xa7   : > { %v522_v19 = vpop.f32.mrf.mxu2  ;;  %841 = vmatmul.bf16.vlgmr.msrb.gmra.mxu0 %v565_v16 }
  0xa8   : > { %v523_v21 = vadd.f32 %v522_v19, %v410_v4  ;;  %860 = vmatmul.bf16.vlgmr.msrb.gmra.mxu1 %v566_v18  ;;  %v487_v22 = vpop.f32.mrf.mxu0 }
  0xa9   : > { %v541_v23 = vpop.f32.mrf.mxu3  ;;  %v506_v26 = vpop.f32.mrf.mxu1  ;;  %v488_v31 = vadd.f32 %v487_v22, %v408_v61 }
  0xaa   : > { %v542_v27 = vadd.f32 %v541_v23, %v411_v10  ;;  %v555_v28 = vmax.f32 %v523_v21, 0.0  ;;  %v507_v34 = vadd.f32 %v506_v26, %v409_v0 }
  0xab   : > { %v557_v37 = vmax.f32 %v488_v31, 0.0 }
  0xac   : > { %v556_v29 = vmax.f32 %v542_v27, 0.0  ;;  %v567_v30 = vpack.c.bf16 %v555_v28, %v551_v20  ;;  %v558_v43 = vmax.f32 %v507_v34, 0.0 }
  0xae   : > { %v568_v32 = vpack.c.bf16 %v556_v29, %v552_v25  ;;  %879 = vmatmul.bf16.vlgmr.msrb.gmra.mxu2 %v567_v30 }
  0xaf   : > { %v525_v33 = vpop.f32.mrf.mxu2 }
  0xb0   : > { %898 = vmatmul.bf16.vlgmr.msrb.gmra.mxu3 %v568_v32  ;;  %v489_v35 = vpop.f32.mrf.mxu0  ;;  %v526_v44 = vadd.f32 %v525_v33, %v410_v4 }
  0xb1   : > { %v544_v36 = vpop.f32.mrf.mxu3  ;;  %v490_v38 = vadd.f32 %v489_v35, %v408_v61  ;;  %v508_v40 = vpop.f32.mrf.mxu1  ;;  %v925_v61 = vld [vmem:[%s2292_s7 + $0x60] sm:$0xff] }
  0xb2   : > { %v509_v41 = vadd.f32 %v508_v40, %v409_v0  ;;  %v545_v46 = vadd.f32 %v544_v36, %v411_v10  ;;  %v559_v50 = vmax.f32 %v526_v44, 0.0  ;;  %932 = vmatpush.msra.mxu0 %v925_v61  ;;  %v923_v0 = vld [vmem:[%s2292_s7 + $0x50] sm:$0xff] }
  0xb3   : > { %v561_v42 = vmax.f32 %v490_v38, 0.0  ;;  %v1663_v38 = vld [vmem:[#allocation4] ss:$0 sm:$0xff] }
  0xb4   : > { %v562_v45 = vmax.f32 %v509_v41, 0.0  ;;  %v560_v55 = vmax.f32 %v545_v46, 0.0  ;;  %933 = vmatpush.msra.mxu0 %v924_v63 }
  0xb5   : > { %v569_v47 = vpack.c.bf16 %v561_v42, %v557_v37 }
  0xb6   : > { %v570_v48 = vpack.c.bf16 %v562_v45, %v558_v43  ;;  %934 = vmatpush.msra.mxu0 %v923_v0 }
  0xb7   : > { %v527_v49 = vpop.f32.mrf.mxu2  ;;  %846 = vmatmul.bf16.gmra.mxu0 %v569_v47 }
  0xb8   : > { %v528_v51 = vadd.f32 %v527_v49, %v410_v4  ;;  %865 = vmatmul.bf16.gmra.mxu1 %v570_v48  ;;  %935 = vmatpush.msra.mxu0 %v922_v1  ;;  %v917_v4 = vld [vmem:[%s2292_s7 + $0x20] sm:$0xff] }
  0xb9   : > { %v546_v52 = vpop.f32.mrf.mxu3 }
  0xba   : > { %v547_v56 = vadd.f32 %v546_v52, %v411_v10  ;;  %v563_v57 = vmax.f32 %v528_v51, 0.0  ;;  %936 = vmatpush.msra.mxu0 %v921_v2 }
  0xbc   : > { %v564_v59 = vmax.f32 %v547_v56, 0.0  ;;  %v571_v60 = vpack.c.bf16 %v563_v57, %v559_v50  ;;  %937 = vmatpush.msra.mxu0 %v920_v3 }
  0xbe   : > { %v572_v62 = vpack.c.bf16 %v564_v59, %v560_v55  ;;  %884 = vmatmul.bf16.gmra.mxu2 %v571_v60 }
  0xc0   : > { %903 = vmatmul.bf16.gmra.mxu3 %v572_v62 }
  0xc8   : > { %1581 = vmatmul.msk.bf16.vlgmr.msra.gmra.mxu1 %vm466_vm0, %v1922_v24  ;;  %v919_v24 = vld [vmem:[%s2292_s7 + $0x30] sm:$0xff] }
  0xc9   : > { %938 = vmatpush.msra.mxu0 %v919_v24  ;;  %v1146_v24 = vld [vmem:[%s2293_s8] sm:$0xff] }
  0xca   : > { %1174 = vmatpush.msra.mxu2 %v1146_v24 }
  0xd8   : > { %1582 = vmatmul.msk.bf16.gmra.mxu1 %vm466_vm0, %v1975_v39  ;;  %v918_v39 = vld [vmem:[%s2292_s7 + $0x28] sm:$0xff] }
  0xd9   : > { %939 = vmatpush.msra.mxu0 %v918_v39 }
  0xdb   : > { %940 = vmatpush.msra.mxu0 %v917_v4 }
  0xdd   : > { %941 = vmatpush.msra.mxu0 %v916_v5 }
  0xdf   : > { %942 = vmatpush.msra.mxu0 %v915_v6 }
  0xe1   : > { %943 = vmatpush.msra.mxu0 %v914_v7 }
  0xe3   : > { %944 = vmatpush.msra.mxu0 %v913_v8 }
 0x124   : > { %v842_v9 = vpop.f32.mrf.mxu0 }
 0x125   : > { %v861_v10 = vpop.f32.mrf.mxu1  ;;  %v843_v12 = vadd.f32 %v1662_v11, %v842_v9 }
 0x127   : > { %v862_v15 = vadd.f32 %v861_v10, %v843_v12 }
 0x12c   : > { %v844_v13 = vpop.f32.mrf.mxu0 }
 0x12d   : > { %v863_v14 = vpop.f32.mrf.mxu1  ;;  %v845_v19 = vadd.f32 %v1662_v11, %v844_v13 }
 0x12f   : > { %v864_v25 = vadd.f32 %v863_v14, %v845_v19 }
 0x131   : > { %v880_v16 = vpop.f32.mrf.mxu2 }
 0x132   : > { %v881_v17 = vadd.f32 %v880_v16, %v862_v15 }
 0x133   : > { %v899_v18 = vpop.f32.mrf.mxu3 }
 0x134   : > { %v2100_v20 = vadd.f32 %v899_v18, %v881_v17  ;;  %v847_v23 = vpop.f32.mrf.mxu0 }
 0x135   : > { %v866_v21 = vpop.f32.mrf.mxu1  ;;  %v848_v29 = vadd.f32 %v1662_v11, %v847_v23 }
 0x136   : > { %v909_v22 = vmul.f32 %v2100_v20, %v2100_v20 }
 0x137   : > { %v867_v33 = vadd.f32 %v866_v21, %v848_v29 }
 0x138   : > { %945 = vmatmul.f32.vlgmr.msra.gmra.mxu0 %v909_v22 }
 0x139   : > { %v882_v26 = vpop.f32.mrf.mxu2 }
 0x13a   : > { %v883_v27 = vadd.f32 %v882_v26, %v864_v25 }
 0x13b   : > { %v901_v28 = vpop.f32.mrf.mxu3 }
 0x13c   : > { %v2104_v30 = vadd.f32 %v901_v28, %v883_v27  ;;  %v849_v34 = vpop.f32.mrf.mxu0 }
 0x13d   : > { %v868_v31 = vpop.f32.mrf.mxu1  ;;  %v850_v40 = vadd.f32 %v1662_v11, %v849_v34 }
 0x13e   : > { %v910_v32 = vmul.f32 %v2104_v30, %v2104_v30 }
 0x13f   : > { %v869_v45 = vadd.f32 %v868_v31, %v850_v40 }
 0x140   : > { %948 = vmatmul.f32.gmra.mxu0 %v910_v32 }
 0x141   : > { %v885_v35 = vpop.f32.mrf.mxu2 }
 0x142   : > { %v886_v36 = vadd.f32 %v885_v35, %v867_v33 }
 0x143   : > { %v904_v37 = vpop.f32.mrf.mxu3 }
 0x144   : > { %v2108_v41 = vadd.f32 %v904_v37, %v886_v36 }
 0x145   : > { %v1031_v42 = vpop.f32.mrf.mxu1 }
 0x146   : > { %v1032_v43 = vadd.f32 %v1663_v38, %v1031_v42  ;;  %v911_v44 = vmul.f32 %v2108_v41, %v2108_v41 }
 0x148   : > { %v1041_v46 = vmul.f32 0.5, %v1032_v43  ;;  %951 = vmatmul.f32.gmra.mxu0 %v911_v44 }
 0x149   : > { %v887_v47 = vpop.f32.mrf.mxu2 }
 0x14a   : > { %v888_v48 = vadd.f32 %v887_v47, %v869_v45  ;;  %v1046_v50 = vsel %vm1045_vm1, %v1041_v46, -inf }
 0x14b   : > { %v906_v49 = vpop.f32.mrf.mxu3  ;;  %1047 = vmax.xlane.f32.xlu0 %v1046_v50 }
 0x14c   : > { %v2113_v51 = vadd.f32 %v906_v49, %v888_v48 }
 0x14d   : > { %v1033_v52 = vpop.f32.mrf.mxu1 }
 0x14e   : > { %v1034_v53 = vadd.f32 %v1663_v38, %v1033_v52  ;;  %v912_v54 = vmul.f32 %v2113_v51, %v2113_v51 }
 0x150   : > { %v1042_v55 = vmul.f32 0.5, %v1034_v53  ;;  %954 = vmatmul.f32.gmra.mxu0 %v912_v54 }
 0x152   : > { %v1049_v56 = vsel %vm1045_vm1, %v1042_v55, -inf }
 0x153   : > { %1050 = vmax.xlane.f32.xlu0 %v1049_v56 }
 0x155   : > { %v1036_v57 = vpop.f32.mrf.mxu1 }
 0x156   : > { %v1037_v58 = vadd.f32 %v1663_v38, %v1036_v57  ;;  %v1207_v57 = vld [vmem:[%s2294_s9 + $0x78] sm:$0xff] }
 0x157   : > { %1208 = vmatpush.msra.mxu3 %v1207_v57 }
 0x158   : > { %v1043_v59 = vmul.f32 0.5, %v1037_v58  ;;  %v1206_v58 = vld [vmem:[%s2294_s9 + $0x70] sm:$0xff] }
 0x159   : > { %1209 = vmatpush.msra.mxu3 %v1206_v58 }
 0x15a   : > { %v1052_v60 = vsel %vm1045_vm1, %v1043_v59, -inf }
 0x15b   : > { %1053 = vmax.xlane.f32.xlu1 %v1052_v60 }
 0x15d   : > { %v1038_v61 = vpop.f32.mrf.mxu1 }
 0x15e   : > { %v1039_v62 = vadd.f32 %v1663_v38, %v1038_v61 }
 0x160   : > { %v1044_v63 = vmul.f32 0.5, %v1039_v62 }
 0x162   : > { %v1055_v0 = vsel %vm1045_vm1, %v1044_v63, -inf }
 0x163   : > { %1056 = vmax.xlane.f32.xlu1 %v1055_v0 }
 0x1b5   : > { %v946_v21 = vpop.f32.mrf.mxu0 }
 0x1b6   : > { %v958_v22 = vmax.f32 %v946_v21, 1e-24 }
 0x1b8   : > { %vm968_vm7 = vweird.f32 %v958_v22 }
 0x1bd   : > { %v949_v23 = vpop.f32.mrf.mxu0 }
 0x1be   : > { %v1048_v1 = vpop.xlane.xlu0 %1047  ;;  %v2139_v25 = vmax.f32 %v949_v23, 1e-24 }
 0x1bf   : > { %v1058_v2 = vsub.f32 %v1041_v46, %v1048_v1 }
 0x1c0   : > { %vm978_vm14 = vweird.f32 %v2139_v25 }
 0x1c1   : > { %v1062_v3 = vmul.f32 1.442695, %v1058_v2 }
 0x1c3   : > { %1664 = vpow2.f32 %v1062_v3 }
 0x1c5   : > { %v952_v27 = vpop.f32.mrf.mxu0 }
 0x1c6   : > { %v1051_v39 = vpop.xlane.xlu0 %1050  ;;  %v2142_v31 = vmax.f32 %v952_v27, 1e-24 }
 0x1c7   : > { %v1059_v4 = vsub.f32 %v1042_v55, %v1051_v39  ;;  %v1204_v39 = vld [vmem:[%s2294_s9 + $0x60] sm:$0xff] }
 0x1c9   : > { %v2123_v5 = vpop.eup %1664  ;;  %v1064_v6 = vmul.f32 1.442695, %v1059_v4 }
 0x1ca   : > { %v1070_v7 = vsel %vm1045_vm1, %v2123_v5, 0.0 }
 0x1cb   : > { %1666 = vpow2.f32 %v1064_v6  ;;  %1071 = vadd.xlane.f32.xlu2 %v1070_v7 }
 0x1cd   : > { %v955_v37 = vpop.f32.mrf.mxu0 }
 0x1ce   : > { %v1054_v8 = vpop.xlane.xlu1 %1053  ;;  %v2152_v42 = vmax.f32 %v955_v37, 1e-24 }
 0x1cf   : > { %v1060_v9 = vsub.f32 %v1043_v59, %v1054_v8 }
 0x1d1   : > { %v2127_v10 = vpop.eup %1666  ;;  %v1066_v11 = vmul.f32 1.442695, %v1060_v9  ;;  %v1203_v9 = vld [vmem:[%s2294_s9 + $0x58] sm:$0xff] }
 0x1d2   : > { %v1073_v12 = vsel %vm1045_vm1, %v2127_v10, 0.0 }
 0x1d3   : > { %1668 = vpow2.f32 %v1066_v11  ;;  %1074 = vadd.xlane.f32.xlu2 %v1073_v12 }
 0x1d6   : > { %v1057_v13 = vpop.xlane.xlu1 %1056 }
 0x1d7   : > { %v1061_v14 = vsub.f32 %v1044_v63, %v1057_v13  ;;  %v1205_v63 = vld [vmem:[%s2294_s9 + $0x68] sm:$0xff] }
 0x1d8   : > { %1210 = vmatpush.msra.mxu3 %v1205_v63 }
 0x1d9   : > { %v2131_v15 = vpop.eup %1668  ;;  %v1068_v16 = vmul.f32 1.442695, %v1061_v14 }
 0x1da   : > { %v1076_v17 = vsel %vm1045_vm1, %v2131_v15, 0.0  ;;  %1211 = vmatpush.msra.mxu3 %v1204_v39 }
 0x1db   : > { %1670 = vpow2.f32 %v1068_v16  ;;  %1077 = vadd.xlane.f32.xlu0 %v1076_v17  ;;  %v1202_v16 = vld [vmem:[%s2294_s9 + $0x50] sm:$0xff] }
 0x1dc   : > { %1672 = vrsqrt.f32 %v958_v22  ;;  %1212 = vmatpush.msra.mxu3 %v1203_v9 }
 0x1dd   : > { %1674 = vrsqrt.f32 %v2139_v25 }
 0x1de   : > { %1213 = vmatpush.msra.mxu3 %v1202_v16 }
 0x1e1   : > { %v2135_v18 = vpop.eup %1670 }
 0x1e2   : > { %v1079_v19 = vsel %vm1045_vm1, %v2135_v18, 0.0  ;;  %v1673_v26 = vpop.eup %1672 }
 0x1e3   : > { %1080 = vadd.xlane.f32.xlu1 %v1079_v19  ;;  %v963_v28 = vmul.f32 %v1673_v26, %v958_v22  ;;  %v2144_v33 = vpop.eup %1674  ;;  %vm969_vm3 = vweird.f32 %v1673_v26 }
 0x1e4   : > { %v973_v36 = vmul.f32 %v2144_v33, %v2139_v25  ;;  %vm970_vm8 = vmor %vm968_vm7, %vm969_vm3  ;;  %vm979_vm11 = vweird.f32 %v2144_v33 }
 0x1e5   : > { %v964_v32 = vmul.f32 %v1673_v26, %v963_v28  ;;  %vm980_vm15 = vmor %vm978_vm14, %vm979_vm11 }
 0x1e6   : > { %v974_v45 = vmul.f32 %v2144_v33, %v973_v36  ;;  %v1200_v36 = vld [vmem:[%s2294_s9 + $0x40] sm:$0xff] }
 0x1e7   : > { %v965_v35 = vmul.f32 0.5, %v964_v32 }
 0x1e8   : > { %v975_v54 = vmul.f32 0.5, %v974_v45 }
 0x1e9   : > { %v966_v44 = vsub.f32 1.5, %v965_v35 }
 0x1ea   : > { %v976_v3 = vsub.f32 1.5, %v975_v54 }
 0x1eb   : > { %v967_v53 = vmul.f32 %v1673_v26, %v966_v44 }
 0x1ec   : > { %v977_v22 = vmul.f32 %v2144_v33, %v976_v3  ;;  %v1193_v3 = vld [vmem:[%s2294_s9 + $0x8] sm:$0xff] }
 0x1ed   : > { %v971_v2 = vsel %vm970_vm8, %v1673_v26, %v967_v53  ;;  %v1201_v26 = vld [vmem:[%s2294_s9 + $0x48] sm:$0xff] }
 0x1ee   : > { %1214 = vmatpush.msra.mxu3 %v1201_v26  ;;  %v1197_v53 = vld [vmem:[%s2294_s9 + $0x28] sm:$0xff] }
 0x1f0   : > { %1215 = vmatpush.msra.mxu3 %v1200_v36 }
 0x23e   : > { %v1072_v29 = vpop.xlane.xlu2 %1071 }
 0x23f   : > { %1676 = vrcp.f32 %v1072_v29  ;;  %v1093_v46 = vand.u32 2147483648, %v1072_v29  ;;  %v1091_v49 = vand.u32 2147483647, %v1072_v29  ;;  %vm1087_vm4 = vweird.f32 %v1072_v29 }
 0x240   : > { %1678 = vrsqrt.f32 %v2142_v31 }
 0x241   : > { %v1094_v56 = vor.u32 1.1754944e-38, %v1093_v46  ;;  %vm1092_vm6 = vcmp.eq.f32.partialorder %v1091_v49, 8.507059e+37 }
 0x245   : > { %v1677_v34 = vpop.eup %1676 }
 0x246   : > { %v1083_v38 = vmul.f32 %v1677_v34, %v1072_v29  ;;  %v2149_v40 = vpop.xlane.xlu2 %1074  ;;  %v2155_v47 = vpop.eup %1678  ;;  %vm1088_vm2 = vweird.f32 %v1677_v34 }
 0x247   : > { %1680 = vrcp.f32 %v2149_v40  ;;  %v983_v55 = vmul.f32 %v2155_v47, %v2142_v31  ;;  %vm1089_vm5 = vmor %vm1087_vm4, %vm1088_vm2  ;;  %v1107_v7 = vand.u32 2147483648, %v2149_v40  ;;  %vm1101_vm10 = vweird.f32 %v2149_v40 }
 0x248   : > { %v1084_v43 = vsub.f32 1.0, %v1083_v38  ;;  %1682 = vrsqrt.f32 %v2152_v42  ;;  %v981_v38 = vsel %vm980_vm15, %v2144_v33, %v977_v22  ;;  %vm989_vm3 = vweird.f32 %v2155_v47 }
 0x249   : > { %v984_v24 = vmul.f32 %v2155_v47, %v983_v55  ;;  %v1108_v17 = vor.u32 1.1754944e-38, %v1107_v7  ;;  %v1192_v7 = vld [vmem:[%s2294_s9] sm:$0xff] }
 0x24a   : > { %v1085_v48 = vmul.f32 %v1677_v34, %v1084_v43  ;;  %v1199_v43 = vld [vmem:[%s2294_s9 + $0x38] sm:$0xff] }
 0x24b   : > { %v985_v13 = vmul.f32 0.5, %v984_v24  ;;  %1216 = vmatpush.msra.mxu3 %v1199_v43 }
 0x24c   : > { %v1086_v50 = vadd.f32 %v1677_v34, %v1085_v48  ;;  %v1198_v48 = vld [vmem:[%s2294_s9 + $0x30] sm:$0xff] }
 0x24d   : > { %v1681_v52 = vpop.eup %1680  ;;  %v986_v29 = vsub.f32 1.5, %v985_v13  ;;  %1217 = vmatpush.msra.mxu3 %v1198_v48 }
 0x24e   : > { %v1090_v59 = vsel %vm1089_vm5, %v1677_v34, %v1086_v50  ;;  %v1097_v60 = vmul.f32 %v1681_v52, %v2149_v40  ;;  %v2167_v61 = vpop.xlane.xlu0 %1077  ;;  %v2179_v4 = vpop.eup %1682  ;;  %vm1102_vm9 = vweird.f32 %v1681_v52 }
 0x24f   : > { %v1095_v62 = vsel %vm1092_vm6, %v1094_v56, %v1090_v59  ;;  %1684 = vrcp.f32 %v2167_v61  ;;  %v993_v14 = vmul.f32 %v2179_v4, %v2152_v42  ;;  %vm1103_vm12 = vmor %vm1101_vm10, %vm1102_vm9  ;;  %v1121_v34 = vand.u32 2147483648, %v2167_v61  ;;  %v1196_v59 = vld [vmem:[%s2294_s9 + $0x20] sm:$0xff]  ;;  %1218 = vmatpush.msra.mxu3 %v1197_v53 }
 0x250   : > { %v1138_v0 = vmul.f32 %v2123_v5, %v1095_v62  ;;  %v1098_v1 = vsub.f32 1.0, %v1097_v60  ;;  %v1105_v5 = vand.u32 2147483647, %v2149_v40  ;;  %v1119_v25 = vand.u32 2147483647, %v2167_v61 }
 0x251   : > { %v994_v32 = vmul.f32 %v2179_v4, %v993_v14  ;;  %vm1115_vm2 = vweird.f32 %v2167_v61  ;;  %v1122_v46 = vor.u32 1.1754944e-38, %v1121_v34  ;;  %v987_v33 = vmul.f32 %v2155_v47, %v986_v29  ;;  %1219 = vmatpush.msra.mxu3 %v1196_v59 }
 0x252   : > { %v1099_v6 = vmul.f32 %v1681_v52, %v1098_v1  ;;  %v1142_v8 = vmul.f32 %v1138_v0, %v971_v2  ;;  %vm1106_vm13 = vcmp.eq.f32.partialorder %v1105_v5, 8.507059e+37  ;;  %vm1120_vm5 = vcmp.eq.f32.partialorder %v1119_v25, 8.507059e+37  ;;  %v1194_v0 = vld [vmem:[%s2294_s9 + $0x10] sm:$0xff] }
 0x253   : > { %v995_v45 = vmul.f32 0.5, %v994_v32  ;;  %vm988_vm6 = vweird.f32 %v2142_v31  ;;  %vm999_vm10 = vweird.f32 %v2179_v4 }
 0x254   : > { %v1100_v11 = vadd.f32 %v1681_v52, %v1099_v6  ;;  %1583 = vmatmul.msk.f32.vlgmr.msra.gmra.mxu2 %vm1045_vm1, %v1142_v8  ;;  %vm990_vm7 = vmor %vm988_vm6, %vm989_vm3 }
 0x255   : > { %v1685_v12 = vpop.eup %1684  ;;  %v996_v56 = vsub.f32 1.5, %v995_v45  ;;  %v991_v58 = vsel %vm990_vm7, %v2155_v47, %v987_v33 }
 0x256   : > { %v1111_v19 = vmul.f32 %v1685_v12, %v2167_v61  ;;  %v2195_v21 = vpop.xlane.xlu1 %1080  ;;  %v1104_v23 = vsel %vm1103_vm12, %v1681_v52, %v1100_v11  ;;  %vm1116_vm0 = vweird.f32 %v1685_v12 }
 0x257   : > { %1686 = vrcp.f32 %v2195_v21  ;;  %v1109_v28 = vsel %vm1106_vm13, %v1108_v17, %v1104_v23  ;;  %vm1117_vm4 = vmor %vm1115_vm2, %vm1116_vm0  ;;  %v1135_v57 = vand.u32 2147483648, %v2195_v21  ;;  %v1133_v60 = vand.u32 2147483647, %v2195_v21 }
 0x258   : > { %v1112_v27 = vsub.f32 1.0, %v1111_v19  ;;  %v1139_v35 = vmul.f32 %v2127_v10, %v1109_v28  ;;  %vm1129_vm9 = vweird.f32 %v2195_v21  ;;  %v997_v47 = vmul.f32 %v2179_v4, %v996_v56 }
 0x259   : > { %v1136_v63 = vor.u32 1.1754944e-38, %v1135_v57  ;;  %vm1134_vm12 = vcmp.eq.f32.partialorder %v1133_v60, 8.507059e+37  ;;  %vm998_vm13 = vweird.f32 %v2152_v42 }
 0x25a   : > { %v1113_v37 = vmul.f32 %v1685_v12, %v1112_v27  ;;  %v1143_v40 = vmul.f32 %v1139_v35, %v981_v38  ;;  %vm1000_vm14 = vmor %vm998_vm13, %vm999_vm10 }
 0x25b   : > { %v1001_v39 = vsel %vm1000_vm14, %v2179_v4, %v997_v47 }
 0x25c   : > { %v1114_v44 = vadd.f32 %v1685_v12, %v1113_v37  ;;  %1584 = vmatmul.msk.f32.gmra.mxu2 %vm1045_vm1, %v1143_v40 }
 0x25d   : > { %v1687_v10 = vpop.eup %1686 }
 0x25e   : > { %v1125_v49 = vmul.f32 %v1687_v10, %v2195_v21  ;;  %v1118_v50 = vsel %vm1117_vm4, %v1685_v12, %v1114_v44  ;;  %vm1130_vm8 = vweird.f32 %v1687_v10 }
 0x25f   : > { %v1123_v52 = vsel %vm1120_vm5, %v1122_v46, %v1118_v50  ;;  %vm1131_vm11 = vmor %vm1129_vm9, %vm1130_vm8 }
 0x260   : > { %v1126_v54 = vsub.f32 1.0, %v1125_v49  ;;  %v1140_v55 = vmul.f32 %v2131_v15, %v1123_v52  ;;  %v1195_v15 = vld [vmem:[%s2294_s9 + $0x18] sm:$0xff] }
 0x261   : > { %1220 = vmatpush.msra.mxu3 %v1195_v15 }
 0x262   : > { %v1127_v31 = vmul.f32 %v1687_v10, %v1126_v54  ;;  %v1144_v61 = vmul.f32 %v1140_v55, %v991_v58 }
 0x263   : > { %1221 = vmatpush.msra.mxu3 %v1194_v0 }
 0x264   : > { %v1128_v62 = vadd.f32 %v1687_v10, %v1127_v31  ;;  %1585 = vmatmul.msk.f32.gmra.mxu2 %vm1045_vm1, %v1144_v61 }
 0x265   : > { %1222 = vmatpush.msra.mxu3 %v1193_v3 }
 0x266   : > { %v1132_v1 = vsel %vm1131_vm11, %v1687_v10, %v1128_v62 }
 0x267   : > { %v1137_v2 = vsel %vm1134_vm12, %v1136_v63, %v1132_v1  ;;  %1223 = vmatpush.msra.mxu3 %v1192_v7 }
 0x268   : > { %v1141_v24 = vmul.f32 %v2135_v18, %v1137_v2 }
 0x26a   : > { %v1145_v6 = vmul.f32 %v1141_v24, %v1001_v39 }
 0x26c   : > { %1586 = vmatmul.msk.f32.gmra.mxu2 %vm1045_vm1, %v1145_v6  ;;  %vm1241_vm1 = vcmask 130048  }
 0x2d7   : > { %v1176_v42 = vpop.f32.mrf.mxu2 }
 0x2d8   : > { %v1188_v8 = vmul.f32 %v1176_v42, %v2100_v20 }
 0x2da   : > { %1224 = vmatmul.f32.vlgmr.msra.gmra.mxu3 %v1188_v8 }
 0x2df   : > { %v1179_v5 = vpop.f32.mrf.mxu2 }
 0x2e0   : > { %v1189_v9 = vmul.f32 %v1179_v5, %v2104_v30 }
 0x2e2   : > { %1227 = vmatmul.f32.gmra.mxu3 %v1189_v9 }
 0x2e7   : > { %v1182_v18 = vpop.f32.mrf.mxu2 }
 0x2e8   : > { %v1190_v4 = vmul.f32 %v1182_v18, %v2108_v41 }
 0x2ea   : > { %1230 = vmatmul.f32.gmra.mxu3 %v1190_v4 }
 0x2ef   : > { %v1185_v11 = vpop.f32.mrf.mxu2 }
 0x2f0   : > { %v1191_v12 = vmul.f32 %v1185_v11, %v2113_v51 }
 0x2f2   : > { %1233 = vmatmul.f32.gmra.mxu3 %v1191_v12 }
 0x35d   : > { %v1225_v13 = vpop.f32.mrf.mxu3 }
 0x35e   : > { %v1237_v14 = vmul.f32 %v1225_v13, %v1225_v13 }
 0x360   : > { %v1242_v16 = vsel %vm1241_vm1, %v1237_v14, 0.0 }
 0x361   : > { %1243 = vadd.xlane.f32.xlu2 %v1242_v16 }
 0x365   : > { %v1228_v20 = vpop.f32.mrf.mxu3 }
 0x366   : > { %v1238_v17 = vmul.f32 %v1228_v20, %v1228_v20 }
 0x368   : > { %v1245_v19 = vsel %vm1241_vm1, %v1238_v17, 0.0 }
 0x369   : > { %1246 = vadd.xlane.f32.xlu0 %v1245_v19 }
 0x36d   : > { %v1231_v30 = vpop.f32.mrf.mxu3 }
 0x36e   : > { %v1239_v21 = vmul.f32 %v1231_v30, %v1231_v30 }
 0x370   : > { %v1248_v41 = vsel %vm1241_vm1, %v1239_v21, 0.0 }
 0x371   : > { %1249 = vadd.xlane.f32.xlu1 %v1248_v41 }
 0x375   : > { %v2262_v22 = vpop.f32.mrf.mxu3 }
 0x376   : > { %v1240_v51 = vmul.f32 %v2262_v22, %v2262_v22 }
 0x378   : > { %v1251_v23 = vsel %vm1241_vm1, %v1240_v51, 0.0 }
 0x379   : > { %1252 = vadd.xlane.f32.xlu2 %v1251_v23 }
 0x3d4   : > { %v1244_v26 = vpop.xlane.xlu2 %1243 }
 0x3d5   : > { %v1254_v27 = vmax.f32 %v1244_v26, 1e-24 }
 0x3d7   : > { %1688 = vrsqrt.f32 %v1254_v27  ;;  %vm1264_vm0 = vweird.f32 %v1254_v27 }
 0x3dc   : > { %v1247_v29 = vpop.xlane.xlu0 %1246 }
 0x3dd   : > { %v1689_v28 = vpop.eup %1688  ;;  %v1255_v34 = vmax.f32 %v1247_v29, 1e-24 }
 0x3de   : > { %v1259_v32 = vmul.f32 %v1689_v28, %v1254_v27  ;;  %vm1265_vm15 = vweird.f32 %v1689_v28 }
 0x3df   : > { %1690 = vrsqrt.f32 %v1255_v34  ;;  %vm1266_vm2 = vmor %vm1264_vm0, %vm1265_vm15  ;;  %vm1274_vm4 = vweird.f32 %v1255_v34 }
 0x3e0   : > { %v1260_v35 = vmul.f32 %v1689_v28, %v1259_v32 }
 0x3e2   : > { %v1261_v36 = vmul.f32 0.5, %v1260_v35 }
 0x3e4   : > { %v1262_v37 = vsub.f32 1.5, %v1261_v36  ;;  %v1250_v25 = vpop.xlane.xlu1 %1249 }
 0x3e5   : > { %v1691_v38 = vpop.eup %1690  ;;  %v1256_v43 = vmax.f32 %v1250_v25, 1e-24 }
 0x3e6   : > { %v1263_v40 = vmul.f32 %v1689_v28, %v1262_v37  ;;  %v1269_v44 = vmul.f32 %v1691_v38, %v1255_v34  ;;  %vm1275_vm3 = vweird.f32 %v1691_v38 }
 0x3e7   : > { %1692 = vrsqrt.f32 %v1256_v43  ;;  %vm1276_vm5 = vmor %vm1274_vm4, %vm1275_vm3  ;;  %vm1284_vm7 = vweird.f32 %v1256_v43 }
 0x3e8   : > { %v1267_v10 = vsel %vm1266_vm2, %v1689_v28, %v1263_v40  ;;  %v1270_v46 = vmul.f32 %v1691_v38, %v1269_v44 }
 0x3e9   : > { %v1298_v45 = vmul.f32 %v1267_v10, %v1225_v13 }
 0x3ea   : > { %v1271_v33 = vmul.f32 0.5, %v1270_v46 }
 0x3eb   : > { %1302 = vst.msk [vmem:[%s2271_s24] sm:$0xff] %vm1241_vm1, %v1298_v45 }
 0x3ec   : > { %v1272_v48 = vsub.f32 1.5, %v1271_v33  ;;  %v1253_v49 = vpop.xlane.xlu2 %1252 }
 0x3ed   : > { %v1693_v50 = vpop.eup %1692  ;;  %v1257_v52 = vmax.f32 %v1253_v49, 1e-24 }
 0x3ee   : > { %v1273_v53 = vmul.f32 %v1691_v38, %v1272_v48  ;;  %v1279_v54 = vmul.f32 %v1693_v50, %v1256_v43  ;;  %vm1285_vm6 = vweird.f32 %v1693_v50 }
 0x3ef   : > { %1694 = vrsqrt.f32 %v1257_v52  ;;  %vm1286_vm8 = vmor %vm1284_vm7, %vm1285_vm6  ;;  %vm1294_vm10 = vweird.f32 %v1257_v52 }
 0x3f0   : > { %v1277_v55 = vsel %vm1276_vm5, %v1691_v38, %v1273_v53  ;;  %v1280_v56 = vmul.f32 %v1693_v50, %v1279_v54 }
 0x3f1   : > { %v1299_v57 = vmul.f32 %v1277_v55, %v1228_v20 }
 0x3f2   : > { %v1281_v58 = vmul.f32 0.5, %v1280_v56 }
 0x3f3   : > { %1303 = vst.msk [vmem:[%s2271_s24 + $0x8] sm:$0xff] %vm1241_vm1, %v1299_v57 }
 0x3f4   : > { %v1282_v59 = vsub.f32 1.5, %v1281_v58 }
 0x3f5   : > { %v1695_v31 = vpop.eup %1694 }
 0x3f6   : > { %v1283_v60 = vmul.f32 %v1693_v50, %v1282_v59  ;;  %v1289_v61 = vmul.f32 %v1695_v31, %v1257_v52  ;;  %vm1295_vm9 = vweird.f32 %v1695_v31 }
 0x3f7   : > { %vm1296_vm11 = vmor %vm1294_vm10, %vm1295_vm9 }
 0x3f8   : > { %v1287_v15 = vsel %vm1286_vm8, %v1693_v50, %v1283_v60  ;;  %v1290_v62 = vmul.f32 %v1695_v31, %v1289_v61 }
 0x3f9   : > { %v1300_v47 = vmul.f32 %v1287_v15, %v1231_v30 }
 0x3fa   : > { %v1291_v63 = vmul.f32 0.5, %v1290_v62 }
 0x3fb   : > { %1304 = vst.msk [vmem:[%s2271_s24 + $0x10] sm:$0xff] %vm1241_vm1, %v1300_v47 }
 0x3fc   : > { %v1292_v0 = vsub.f32 1.5, %v1291_v63 }
 0x3fe   : > { %v1293_v1 = vmul.f32 %v1695_v31, %v1292_v0 }
 0x400   : > { %v1297_v2 = vsel %vm1296_vm11, %v1695_v31, %v1293_v1 }
 0x401   : > { %v1301_v3 = vmul.f32 %v1297_v2, %v2262_v22 }
 0x403   : > { %1305 = vst.msk [vmem:[%s2271_s24 + $0x18] sm:$0xff] %vm1241_vm1, %v1301_v3 }
 0x404 PF: > { %s22_s13 = sadd.s32 1, %s1770_s13  }
 0x405   : > { %p19_p7 = scmp.ge.s32.totalorder %s22_s13, 4  }
 0x407   :  { %21 = sbr.rel (!%p19_p7) target bundleno = 2 (0x2), region = 99 }
 0x40c   :  { %1328 = vsyncpa [#allocation3], 1 }
 0x40d   :  { %1330 = vsyncpa [#allocation3 + $0x1], 1 }
 0x40e   :  { %1331 = vsyncpa [#allocation5], 1 }

</bundles_post_ra>
